<compile_context>
chip_gen: v7x
topology: tpu7x:2x2x1
jax: 0.10.0
libtpu: 0.0.40
codegen_flags: <defaults>
</compile_context>

<pallas_src>
import functools

import jax
import jax.numpy as jnp
from jax.experimental import pallas as pl
from jax.experimental.pallas import tpu as pltpu

_MIB = 1 << 20


def _embed_rmsnorm_kernel(ids_ref, tok_ref, pos_ref, scale_ref, out_ref, *,
                          eps, vocab, use_onehot):
    """One grid step processes a (block_t, E) slab of flattened (B*T) tokens.

    ids_ref:   (block_t, 1) int32  token ids for this slab (sublane-aligned column)
    tok_ref:   (V, E)              token-embedding table, VMEM resident across the grid
    pos_ref:   (block_t, E)        positional-embedding rows for this slab (streamed)
    scale_ref: (1, E)              RMSNorm scale, resident
    out_ref:   (block_t, E)        output slab (lane-dense, unmasked stores)
    """
    # Clamp ids: dynamic gathers on VMEM refs have no runtime bounds check on TPU.
    ids = jnp.clip(ids_ref[...], 0, vocab - 1)                      # (block_t, 1)

    if use_onehot:
        # Small vocab: gather = one_hot(ids) @ table on the (otherwise idle) MXU.
        # No serial row copies, no scratch round trip.
        iota_v = jax.lax.broadcasted_iota(jnp.int32, (ids.shape[0], vocab), 1)
        onehot = (ids == iota_v).astype(tok_ref.dtype)              # lane broadcast of ids
        tok = jnp.dot(onehot, tok_ref[...], preferred_element_type=jnp.float32)
    else:
        # Larger vocab: vectorized dynamic gather over the resident table.
        tok = jnp.take(tok_ref[...], ids[:, 0], axis=0).astype(jnp.float32)

    x = tok + pos_ref[...].astype(jnp.float32)
    mean_sq = jnp.mean(x * x, axis=-1, keepdims=True)
    inv_rms = jax.lax.rsqrt(mean_sq + eps)                          # EUP slot; VPU stays free
    out_ref[...] = (scale_ref[...].astype(jnp.float32) * (x * inv_rms)).astype(out_ref.dtype)
    # TODO(synk): training-mode dropout (p=0.1) omitted; eval-mode dropout is identity.


def _pick_block_tokens(n_rows, e_dim, vocab, tok_bytes, out_bytes, use_onehot,
                       budget_bytes=24 * _MIB):
    """Largest multiple-of-8 divisor of n_rows whose streaming buffers fit a VMEM
    budget that is safe on v5e/v6e/v7x (we also set vmem_limit_bytes explicitly)."""
    table_bytes = vocab * e_dim * tok_bytes
    per_row = 2 * e_dim * 4 + 2 * e_dim * out_bytes + 2 * 4        # 2x pos + 2x out + ids
    if use_onehot:
        per_row += vocab * 4                                        # one-hot temporary
    avail = max(budget_bytes - table_bytes - e_dim * 4, 8 * per_row)
    cap = max(8, min(2048, avail // per_row))
    best, d = 0, 8
    while d <= min(n_rows, cap):
        if n_rows % d == 0:
            best = d
        d += 8
    return best if best > 0 else n_rows      # block == full dim is always legal


def _vmem_limit_bytes(vocab, e_dim, block_t, tok_bytes, out_bytes, use_onehot):
    need = vocab * e_dim * tok_bytes                  # resident token table
    need += 2 * block_t * e_dim * 4                   # pos blocks (double-buffered)
    need += 2 * block_t * e_dim * out_bytes           # out blocks (double-buffered)
    need += 2 * block_t * 4 + e_dim * 4               # ids blocks + scale
    if use_onehot:
        need += block_t * max(vocab, 128) * 4         # one-hot temporary
    need = int(need * 1.5) + 2 * _MIB                 # headroom for compiler scratch
    return max(16 * _MIB, min(need, 64 * _MIB))       # 64 MiB = v7x physical ceiling


def embeddings_forward(ids, tok_emb, pos_emb, scale, eps=1e-8,
                       block_t=None, out_dtype=jnp.float32):
    """ids: (B, T) int token ids -> (B, T, E).  out_dtype=f32 matches the PyTorch
    contract (RMSNorm casts to float); pass bf16 to halve HBM writeback if callers allow."""
    B, T = ids.shape
    V, E = tok_emb.shape
    n_rows = B * T

    use_onehot = V <= 2048                    # small vocab -> MXU one-hot gather
    tok_bytes = jnp.dtype(tok_emb.dtype).itemsize
    out_bytes = jnp.dtype(out_dtype).itemsize

    if block_t is None:
        block_t = _pick_block_tokens(n_rows, E, V, tok_bytes, out_bytes, use_onehot)
    assert n_rows % block_t == 0
    n_blocks = n_rows // block_t

    ids_col = ids.reshape(n_rows, 1).astype(jnp.int32)
    scale2d = scale.reshape(1, E)

    # Positions are arange(T) per batch row.  If block_t tiles T exactly, stream the
    # (T, E) slice with a modular block index (no duplication); otherwise (short T /
    # blocks spanning batch rows) pre-tile to (n_rows, E) on the host.
    if T % block_t == 0:
        pos_in = pos_emb[:T]
        n_t = T // block_t
        pos_map = lambda i: (i % n_t, 0)
    else:
        pos_in = jnp.tile(pos_emb[:T], (B, 1))
        pos_map = lambda i: (i, 0)

    # TODO(synk): for vocab tables larger than the VMEM budget (esp. v7x's 64 MiB /
    # 32 MiB scoped), switch tok_emb to memory_space=pl.ANY + double-buffered
    # make_async_copy row gathers instead of VMEM residency.
    vmem_limit = _vmem_limit_bytes(V, E, block_t, tok_bytes, out_bytes, use_onehot)

    kernel = functools.partial(_embed_rmsnorm_kernel, eps=eps, vocab=V,
                               use_onehot=use_onehot)
    out_shape = jax.ShapeDtypeStruct((n_rows, E), out_dtype)
    compiler_params = pltpu.CompilerParams(
        dimension_semantics=("parallel",),     # lets v7x shard grid steps across its 2 TCs
        vmem_limit_bytes=vmem_limit)

    def call(single_buffer_resident):
        def resident(shape, index_map):
            if single_buffer_resident:
                # Constant-index resident inputs: don't pay for double buffering.
                return pl.BlockSpec(shape, index_map, pipeline_mode=pl.Buffered(1))
            return pl.BlockSpec(shape, index_map)

        in_specs = [
            pl.BlockSpec((block_t, 1), lambda i: (i, 0)),    # ids (streamed column)
            resident((V, E), lambda i: (0, 0)),              # token table (resident)
            pl.BlockSpec((block_t, E), pos_map),             # positions (streamed)
            resident((1, E), lambda i: (0, 0)),              # RMSNorm scale (resident)
        ]
        out = pl.pallas_call(
            kernel,
            grid=(n_blocks,),
            in_specs=in_specs,
            out_specs=pl.BlockSpec((block_t, E), lambda i: (i, 0)),
            out_shape=out_shape,
            compiler_params=compiler_params,
        )(ids_col, tok_emb, pos_in, scale2d)
        return jax.block_until_ready(out)

    try:
        out = call(True)
    except Exception:
        # This Pallas version rejected pipeline_mode=pl.Buffered(1); default
        # double-buffered resident specs are functionally identical (more VMEM).
        out = call(False)

    return out.reshape(B, T, E)


def embeddings_reference(ids, tok_emb, pos_emb, scale, eps=1e-8):
    """Pure-JAX reference mirroring the PyTorch forward."""
    B, T = ids.shape
    positions = jnp.broadcast_to(jnp.arange(T), (B, T))
    x = jnp.take(tok_emb, ids, axis=0) + jnp.take(pos_emb, positions, axis=0)
    x = x.astype(jnp.float32)
    rms = jnp.sqrt(jnp.mean(x * x, axis=-1, keepdims=True) + eps)
    return scale.astype(jnp.float32) * (x / rms)


if __name__ == "__main__":
    B, T, E = 2, 8, 128
    VOCAB, MAX_LEN = 100, 512

    key = jax.random.PRNGKey(0)
    k_tok, k_pos, k_ids = jax.random.split(key, 3)

    # Deterministic synthetic parameters (shapes from Embeddings.__init__).
    tok_emb = (0.02 * jax.random.normal(k_tok, (VOCAB, E))).astype(jnp.float32)
    pos_emb = (0.02 * jax.random.normal(k_pos, (MAX_LEN, E))).astype(jnp.float32)
    scale = jnp.ones((E,), dtype=jnp.float32)  # RMSNorm.scale init
    ids = jax.random.randint(k_ids, (B, T), 0, VOCAB, dtype=jnp.int32)

    out = embeddings_forward(ids, tok_emb, pos_emb, scale)
    out = jax.block_until_ready(out)

    ref = embeddings_reference(ids, tok_emb, pos_emb, scale)
    assert out.shape == (B, T, E) and out.dtype == jnp.float32
    assert jnp.allclose(out, ref, atol=1e-5, rtol=1e-5)

    print("KERNEL_OK")
</pallas_src>

<mosaic_0001>
module attributes {stable_mosaic.version = 11 : i64} {
  func.func @_embed_rmsnorm_kernel(%arg0: i32, %arg1: memref<16x1xi32, #tpu.memory_space<vmem>>, %arg2: memref<100x128xf32, #tpu.memory_space<vmem>>, %arg3: memref<16x128xf32, #tpu.memory_space<vmem>>, %arg4: memref<1x128xf32, #tpu.memory_space<vmem>>, %arg5: memref<16x128xf32, #tpu.memory_space<vmem>>) attributes {dimension_semantics = [#tpu.dimension_semantics<parallel>], iteration_bounds = array<i64: 1>, scalar_prefetch = 0 : i64, scratch_operands = 0 : i64, tpu.core_type = #tpu.core_type<tc>, window_params = [{transform_indices = @transform_0, window_bounds = array<i64: 16, 1>}, {pipeline_mode = #tpu.pipeline_mode<synchronous>, transform_indices = @transform_1, window_bounds = array<i64: 100, 128>}, {transform_indices = @transform_2, window_bounds = array<i64: 16, 128>}, {pipeline_mode = #tpu.pipeline_mode<synchronous>, transform_indices = @transform_3, window_bounds = array<i64: 1, 128>}, {transform_indices = @transform_4, window_bounds = array<i64: 16, 128>}]} {
    %c0 = arith.constant 0 : index
    %c0_0 = arith.constant 0 : index
    %0 = vector.load %arg1[%c0, %c0_0] : memref<16x1xi32, #tpu.memory_space<vmem>>, vector<16x1xi32>
    %c0_i32 = arith.constant 0 : i32
    %c99_i32 = arith.constant 99 : i32
    %1 = vector.broadcast %c0_i32 : i32 to vector<16x1xi32>
    %2 = arith.maxsi %1, %0 : vector<16x1xi32>
    %3 = vector.broadcast %c99_i32 : i32 to vector<16x1xi32>
    %4 = arith.minsi %3, %2 : vector<16x1xi32>
    %5 = tpu.iota {dimensions = array<i32: 1>} : vector<16x100xi32>
    %6 = vector.broadcast %4 : vector<16x1xi32> to vector<16x100xi32>
    %7 = arith.cmpi eq, %6, %5 : vector<16x100xi32>
    %8 = arith.extui %7 : vector<16x100xi1> to vector<16x100xi32>
    %9 = arith.sitofp %8 : vector<16x100xi32> to vector<16x100xf32>
    %c0_1 = arith.constant 0 : index
    %c0_2 = arith.constant 0 : index
    %10 = vector.load %arg2[%c0_1, %c0_2] : memref<100x128xf32, #tpu.memory_space<vmem>>, vector<100x128xf32>
    %cst = arith.constant dense<0.000000e+00> : vector<16x128xf32>
    %11 = tpu.matmul %9, %10, %cst {dimension_numbers = #tpu.dot_dimension_numbers<[1], [0], [0], [1], [0, 0, 1, 1], [], []>} : vector<16x100xf32>, vector<100x128xf32>, vector<16x128xf32> -> vector<16x128xf32>
    %c0_3 = arith.constant 0 : index
    %c0_4 = arith.constant 0 : index
    %12 = vector.load %arg3[%c0_3, %c0_4] : memref<16x128xf32, #tpu.memory_space<vmem>>, vector<16x128xf32>
    %13 = arith.addf %11, %12 : vector<16x128xf32>
    %14 = arith.mulf %13, %13 : vector<16x128xf32>
    %cst_5 = arith.constant dense<0.000000e+00> : vector<16xf32>
    %15 = vector.multi_reduction <add>, %14, %cst_5 [1] : vector<16x128xf32> to vector<16xf32>
    %16 = vector.shape_cast %15 : vector<16xf32> to vector<16x1xf32>
    %cst_6 = arith.constant 1.280000e+02 : f32
    %17 = vector.broadcast %cst_6 : f32 to vector<16x1xf32>
    %18 = arith.divf %16, %17 : vector<16x1xf32>
    %cst_7 = arith.constant 9.99999993E-9 : f32
    %19 = vector.broadcast %cst_7 : f32 to vector<16x1xf32>
    %20 = arith.addf %18, %19 : vector<16x1xf32>
    %21 = math.rsqrt %20 : vector<16x1xf32>
    %c0_8 = arith.constant 0 : index
    %c0_9 = arith.constant 0 : index
    %22 = vector.load %arg4[%c0_8, %c0_9] : memref<1x128xf32, #tpu.memory_space<vmem>>, vector<1x128xf32>
    %23 = vector.broadcast %21 : vector<16x1xf32> to vector<16x128xf32>
    %24 = arith.mulf %13, %23 : vector<16x128xf32>
    %25 = vector.broadcast %22 : vector<1x128xf32> to vector<16x128xf32>
    %26 = arith.mulf %25, %24 : vector<16x128xf32>
    %c0_10 = arith.constant 0 : index
    %c0_11 = arith.constant 0 : index
    %27 = vector.load %arg5[%c0_10, %c0_11] : memref<16x128xf32, #tpu.memory_space<vmem>>, vector<16x128xf32>
    tpu.vector_store %arg5[%c0_10, %c0_11], %26 {strides = array<i32>} : memref<16x128xf32, #tpu.memory_space<vmem>>, vector<16x128xf32>,
    return
  }
  func.func @transform_0(%arg0: i32) -> (i32, i32) {
    %c0_i32 = arith.constant 0 : i32
    %c0_i32_0 = arith.constant 0 : i32
    return %arg0, %c0_i32 : i32, i32
  }
  func.func @transform_1(%arg0: i32) -> (i32, i32) {
    %c0_i32 = arith.constant 0 : i32
    %c0_i32_0 = arith.constant 0 : i32
    %c0_i32_1 = arith.constant 0 : i32
    return %c0_i32, %c0_i32_0 : i32, i32
  }
  func.func @transform_2(%arg0: i32) -> (i32, i32) {
    %c0_i32 = arith.constant 0 : i32
    %c0_i32_0 = arith.constant 0 : i32
    return %arg0, %c0_i32 : i32, i32
  }
  func.func @transform_3(%arg0: i32) -> (i32, i32) {
    %c0_i32 = arith.constant 0 : i32
    %c0_i32_0 = arith.constant 0 : i32
    %c0_i32_1 = arith.constant 0 : i32
    return %c0_i32, %c0_i32_0 : i32, i32
  }
  func.func @transform_4(%arg0: i32) -> (i32, i32) {
    %c0_i32 = arith.constant 0 : i32
    %c0_i32_0 = arith.constant 0 : i32
    return %arg0, %c0_i32 : i32, i32
  }
}

module attributes {stable_mosaic.version = 11 : i64} {
  func.func @_embed_rmsnorm_kernel(%arg0: i32, %arg1: memref<16x1xi32, #tpu.memory_space<vmem>>, %arg2: memref<100x128xf32, #tpu.memory_space<vmem>>, %arg3: memref<16x128xf32, #tpu.memory_space<vmem>>, %arg4: memref<1x128xf32, #tpu.memory_space<vmem>>, %arg5: memref<16x128xf32, #tpu.memory_space<vmem>>) attributes {dimension_semantics = [#tpu.dimension_semantics<parallel>], iteration_bounds = array<i64: 1>, scalar_prefetch = 0 : i64, scratch_operands = 0 : i64, tpu.core_type = #tpu.core_type<tc>, window_params = [{transform_indices = @transform_0, window_bounds = array<i64: 16, 1>}, {pipeline_mode = #tpu.pipeline_mode<synchronous>, transform_indices = @transform_1, window_bounds = array<i64: 100, 128>}, {transform_indices = @transform_2, window_bounds = array<i64: 16, 128>}, {pipeline_mode = #tpu.pipeline_mode<synchronous>, transform_indices = @transform_3, window_bounds = array<i64: 1, 128>}, {transform_indices = @transform_4, window_bounds = array<i64: 16, 128>}]} {
    %c0 = arith.constant 0 : index
    %c0_0 = arith.constant 0 : index
    %0 = vector.load %arg1[%c0, %c0_0] : memref<16x1xi32, #tpu.memory_space<vmem>>, vector<16x1xi32>
    %c0_i32 = arith.constant 0 : i32
    %c99_i32 = arith.constant 99 : i32
    %1 = vector.broadcast %c0_i32 : i32 to vector<16x1xi32>
    %2 = arith.maxsi %1, %0 : vector<16x1xi32>
    %3 = vector.broadcast %c99_i32 : i32 to vector<16x1xi32>
    %4 = arith.minsi %3, %2 : vector<16x1xi32>
    %5 = tpu.iota {dimensions = array<i32: 1>} : vector<16x100xi32>
    %6 = vector.broadcast %4 : vector<16x1xi32> to vector<16x100xi32>
    %7 = arith.cmpi eq, %6, %5 : vector<16x100xi32>
    %8 = arith.extui %7 : vector<16x100xi1> to vector<16x100xi32>
    %9 = arith.sitofp %8 : vector<16x100xi32> to vector<16x100xf32>
    %c0_1 = arith.constant 0 : index
    %c0_2 = arith.constant 0 : index
    %10 = vector.load %arg2[%c0_1, %c0_2] : memref<100x128xf32, #tpu.memory_space<vmem>>, vector<100x128xf32>
    %cst = arith.constant dense<0.000000e+00> : vector<16x128xf32>
    %11 = tpu.matmul %9, %10, %cst {dimension_numbers = #tpu.dot_dimension_numbers<[1], [0], [0], [1], [0, 0, 1, 1], [], []>} : vector<16x100xf32>, vector<100x128xf32>, vector<16x128xf32> -> vector<16x128xf32>
    %c0_3 = arith.constant 0 : index
    %c0_4 = arith.constant 0 : index
    %12 = vector.load %arg3[%c0_3, %c0_4] : memref<16x128xf32, #tpu.memory_space<vmem>>, vector<16x128xf32>
    %13 = arith.addf %11, %12 : vector<16x128xf32>
    %14 = arith.mulf %13, %13 : vector<16x128xf32>
    %cst_5 = arith.constant dense<0.000000e+00> : vector<16xf32>
    %15 = vector.multi_reduction <add>, %14, %cst_5 [1] : vector<16x128xf32> to vector<16xf32>
    %16 = vector.shape_cast %15 : vector<16xf32> to vector<16x1xf32>
    %cst_6 = arith.constant 1.280000e+02 : f32
    %17 = vector.broadcast %cst_6 : f32 to vector<16x1xf32>
    %18 = arith.divf %16, %17 : vector<16x1xf32>
    %cst_7 = arith.constant 9.99999993E-9 : f32
    %19 = vector.broadcast %cst_7 : f32 to vector<16x1xf32>
    %20 = arith.addf %18, %19 : vector<16x1xf32>
    %21 = math.rsqrt %20 : vector<16x1xf32>
    %c0_8 = arith.constant 0 : index
    %c0_9 = arith.constant 0 : index
    %22 = vector.load %arg4[%c0_8, %c0_9] : memref<1x128xf32, #tpu.memory_space<vmem>>, vector<1x128xf32>
    %23 = vector.broadcast %21 : vector<16x1xf32> to vector<16x128xf32>
    %24 = arith.mulf %13, %23 : vector<16x128xf32>
    %25 = vector.broadcast %22 : vector<1x128xf32> to vector<16x128xf32>
    %26 = arith.mulf %25, %24 : vector<16x128xf32>
    %c0_10 = arith.constant 0 : index
    %c0_11 = arith.constant 0 : index
    %27 = vector.load %arg5[%c0_10, %c0_11] : memref<16x128xf32, #tpu.memory_space<vmem>>, vector<16x128xf32>
    tpu.vector_store %arg5[%c0_10, %c0_11], %26 {strides = array<i32>} : memref<16x128xf32, #tpu.memory_space<vmem>>, vector<16x128xf32>,
    return
  }
  func.func @transform_0(%arg0: i32) -> (i32, i32) {
    %c0_i32 = arith.constant 0 : i32
    %c0_i32_0 = arith.constant 0 : i32
    return %arg0, %c0_i32 : i32, i32
  }
  func.func @transform_1(%arg0: i32) -> (i32, i32) {
    %c0_i32 = arith.constant 0 : i32
    %c0_i32_0 = arith.constant 0 : i32
    %c0_i32_1 = arith.constant 0 : i32
    return %c0_i32, %c0_i32_0 : i32, i32
  }
  func.func @transform_2(%arg0: i32) -> (i32, i32) {
    %c0_i32 = arith.constant 0 : i32
    %c0_i32_0 = arith.constant 0 : i32
    return %arg0, %c0_i32 : i32, i32
  }
  func.func @transform_3(%arg0: i32) -> (i32, i32) {
    %c0_i32 = arith.constant 0 : i32
    %c0_i32_0 = arith.constant 0 : i32
    %c0_i32_1 = arith.constant 0 : i32
    return %c0_i32, %c0_i32_0 : i32, i32
  }
  func.func @transform_4(%arg0: i32) -> (i32, i32) {
    %c0_i32 = arith.constant 0 : i32
    %c0_i32_0 = arith.constant 0 : i32
    return %arg0, %c0_i32 : i32, i32
  }
}

</mosaic_0001>

<bundles_post_ra>
// kernel: tpu_custom_call.1
= control target key start
LH: loop header
LB: loop body
LE: loop exit
PB: predicated region body
PF: predicated region fallthrough
CT: control target
= control target key end

     0   :  { %9 = vsyncpa [#allocation3], 0  ;;  %s409_s0 = inlined_call_operand.vmem [shape: s32[16,1], index: 0, kind: input, shape index: {}]   ;;  %s410_s1 = inlined_call_operand.hbm [shape: f32[100,128], index: 1, kind: input, shape index: {}]   ;;  %s411_s2 = inlined_call_operand.vmem [shape: f32[16,128], index: 2, kind: input, shape index: {}]   ;;  %s412_s3 = inlined_call_operand.vmem [shape: f32[1,128], index: 3, kind: input, shape index: {}]   ;;  %s413_s4 = inlined_call_operand.hbm [shape: f32[16,128], index: 4, kind: output, shape index: {}]  }
   0x1   :  { %10 = vsyncpa [#allocation4], 0  ;;  %s333_s15 = smov [#allocation2]   ;;  %s285_s19 = scalar_lea.hbm %s410_s1, 1664 }
   0x2   :  { %s18_s16 = sshll.u32 %s333_s15, 4  ;;  %p286_p0 = scmp.ne.s32.totalorder %s410_s1, %s285_s19  ;;  %s19_s16 = int_to_ptr.vmem [resolvable:$true] %s18_s16 }
   0x3   :  { %p289_p1 = scmp.lt.u32.totalorder %s285_s19, %s410_s1 }
   0x5   :  { %p291_p2 = pnand %p289_p1, %p286_p0 }
   0x7   :  { %294 = shalt.err (!%p291_p2)
}
   0x8   :  { %s295_s24 = scalar_lea.vmem %s19_s16, 1664  ;;  %p300_p4 = scmp.lt.s32.totalorder %s19_s16, %s19_s16 }
   0x9   :  { %p296_p3 = scmp.ne.s32.totalorder %s19_s16, %s295_s24  ;;  %p301_p5 = scmp.lt.s32.totalorder %s295_s24, %s295_s24 }
   0xb   :  { %p302_p6 = por %p301_p5, %p300_p4 }
   0xd   :  { %p303_p7 = pnand %p302_p6, %p296_p3 }
   0xf   :  { %306 = shalt.err (!%p303_p7)
}
  0x10   :  { %s334_s25 = smov 128   ;;  %s335_s26 = smov 8  }
  0x11   :  { %24 = dma.hbm_to_vmem [thread:$0]  %s410_s1, 1664, %s19_s16, [#allocation3], %s334_s25, %s334_s25, %s335_s26  }
  0x12   :  { %329 = dma.done.wait [#allocation3], 1664  }
  0x13   :  { %330 = vsyncadd [#allocation3], 4294965632  ;;  %v336_v0 = vmov 0   ;;  %v32_v1 = vld [vmem:[%s409_s0] sm:$0xff]  ;;  %v33_v2 = vld [vmem:[%s409_s0 + $0x8] sm:$0xff]  ;;  %vm78_vm4 = vcmask 1043456   ;;  %v42_v26 = vlaneseq }
  0x14   :  { %280 = vset.pattern.permute.xlu0 %v336_v0  ;;  %v56_v3 = vld [vmem:[#allocation2] sm:$0xff]  ;;  %vm34_vm0 = vcmp.gt.s32.totalorder %v32_v1, 0  ;;  %vm36_vm1 = vcmp.gt.s32.totalorder %v33_v2, 0  ;;  %v57_v4 = vld [vmem:[#allocation2 + $0x8] sm:$0xff]  ;;  %v58_v5 = vld [vmem:[#allocation2 + $0x10] sm:$0xff]  ;;  %vm71_vm5 = vcmask 818176  }
  0x15   :  { %v59_v6 = vld [vmem:[#allocation2 + $0x18] sm:$0xff]  ;;  %v35_v7 = vsel %vm34_vm0, %v32_v1, 0  ;;  %v37_v8 = vsel %vm36_vm1, %v33_v2, 0  ;;  %v250_v9 = vpack.c.bf16 %v57_v4, %v56_v3  ;;  %v60_v11 = vld [vmem:[#allocation2 + $0x20] sm:$0xff]  ;;  %v61_v12 = vld [vmem:[#allocation2 + $0x28] sm:$0xff]  ;;  %v43_v27 = vand.u32 127, %v42_v26 }
  0x16   :  { %v254_v10 = vpack.c.bf16 %v59_v6, %v58_v5  ;;  %vm38_vm2 = vcmp.lt.s32.totalorder %v35_v7, 99  ;;  %vm40_vm3 = vcmp.lt.s32.totalorder %v37_v8, 99  ;;  %v258_v15 = vpack.c.bf16 %v61_v12, %v60_v11  ;;  %v62_v16 = vld [vmem:[#allocation2 + $0x30] sm:$0xff]  ;;  %v63_v17 = vld [vmem:[#allocation2 + $0x38] sm:$0xff]  ;;  %v64_v19 = vld [vmem:[#allocation2 + $0x40] sm:$0xff] }
  0x17   :  { %v39_v13 = vsel %vm38_vm2, %v35_v7, 99  ;;  %251 = vmatprep.subr.bf16.mxu0 %v250_v9  ;;  %v41_v14 = vsel %vm40_vm3, %v37_v8, 99  ;;  %v262_v18 = vpack.c.bf16 %v63_v17, %v62_v16  ;;  %v65_v20 = vld [vmem:[#allocation2 + $0x48] sm:$0xff]  ;;  %v66_v22 = vld [vmem:[#allocation2 + $0x50] sm:$0xff]  ;;  %v67_v23 = vld [vmem:[#allocation2 + $0x58] sm:$0xff]  ;;  %v337_v29 = vmov 0.0  }
  0x18   :  { %45 = vperm.xlu0 %280, %v39_v13   ;;  %253 = vmatpush3.bf16.msra.mxu0 %v250_v9  ;;  %v266_v21 = vpack.c.bf16 %v65_v20, %v64_v19  ;;  %v270_v24 = vpack.c.bf16 %v67_v23, %v66_v22  ;;  %v68_v25 = vld [vmem:[#allocation2 + $0x60] sm:$0xf]  ;;  %v69_v33 = vld [vmem:[%s411_s2] sm:$0xff] }
  0x19   :  { %255 = vmatprep.subr.bf16.mxu0 %v254_v10  ;;  %v70_v35 = vld [vmem:[%s411_s2 + $0x8] sm:$0xff]  ;;  %v205_v48 = vld [vmem:[%s412_s3] ss:$0 sm:$0xff]  ;;  %s338_s2 = smov [#allocation5]  }
  0x1a   :  { %s188_s11 = sshll.u32 %s338_s2, 4  ;;  %s189_s11 = int_to_ptr.vmem [resolvable:$true] %s188_s11 }
  0x1b   :  { %s307_s12 = scalar_lea.vmem %s189_s11, 256  ;;  %p312_p9 = scmp.lt.s32.totalorder %s189_s11, %s189_s11 }
  0x1c   :  { %48 = vperm.xlu0 %280, %v41_v14   ;;  %257 = vmatpush3.bf16.msra.mxu0 %v254_v10  ;;  %p308_p8 = scmp.ne.s32.totalorder %s189_s11, %s307_s12  ;;  %p313_p10 = scmp.lt.s32.totalorder %s307_s12, %s307_s12 }
  0x1d   :  { %259 = vmatprep.subr.bf16.mxu0 %v258_v15 }
  0x1e   :  { %p314_p11 = por %p313_p10, %p312_p9 }
  0x20   :  { %261 = vmatpush3.bf16.msra.mxu0 %v258_v15  ;;  %p315_p12 = pnand %p314_p11, %p308_p8 }
  0x21   :  { %263 = vmatprep.subr.bf16.mxu0 %v262_v18 }
  0x24   :  { %265 = vmatpush3.bf16.msra.mxu0 %v262_v18 }
  0x25   :  { %267 = vmatprep.subr.bf16.mxu0 %v266_v21 }
  0x28   :  { %269 = vmatpush3.bf16.msra.mxu0 %v266_v21 }
  0x29   :  { %271 = vmatprep.subr.bf16.mxu0 %v270_v24 }
  0x2c   :  { %273 = vmatpush3.bf16.msra.mxu0 %v270_v24 }
  0x2d   :  { %245 = vmatprep.subr.msk.mxu0 %vm78_vm4, %v68_v25 }
  0x30   :  { %246 = vmatpush3.msk.msra.mxu0 %vm78_vm4, %v68_v25 }
  0x97   :  { %v46_v28 = vpop.permute.xlu0 %45 }
  0x98   :  { %vm50_vm6 = vcmp.eq.s32.totalorder %v46_v28, %v43_v27 }
  0x99   :  { %v200_v30 = vsel %vm50_vm6, 1.0, %v337_v29 }
  0x9a   :  { %247 = vmatprep.mubr.msk.f32.mxu0 %vm71_vm5, %v200_v30 }
  0x9b   :  { %v49_v31 = vpop.permute.xlu0 %48 }
  0x9c   :  { %vm51_vm7 = vcmp.eq.s32.totalorder %v49_v31, %v43_v27 }
  0x9d   :  { %v201_v32 = vsel %vm51_vm7, 1.0, %v337_v29 }
  0x9e   :  { %248 = vmatmul.mubr.msk.f32.vlgmr.msra.gmra.mrb[0].mxu0 %vm71_vm5, %v201_v32 }
 0x171   :  { %v249_v34 = vpop.f32.mrb[0].mxu0 }
 0x172   :  { %v148_v36 = vpop.f32.mrb[1].mxu0  ;;  %v154_v38 = vadd.f32 %v249_v34, %v70_v35 }
 0x173   :  { %v149_v37 = vadd.f32 %v148_v36, %v69_v33 }
 0x174   :  { %v158_v40 = vmul.f32 %v154_v38, %v154_v38 }
 0x175   :  { %v157_v39 = vmul.f32 %v149_v37, %v149_v37 }
 0x177   :  { %159 = vadd.xlane.f32.xlu1 %v157_v39 }
 0x17b   :  { %161 = vadd.xlane.f32.xlu1 %v158_v40 }
 0x204   :  { %v160_v41 = vpop.xlane.xlu1 %159 }
 0x205   :  { %v164_v42 = vmul.f32 0.0078125, %v160_v41 }
 0x207   :  { %v166_v43 = vadd.f32 1e-08, %v164_v42 }
 0x208   :  { %v162_v44 = vpop.xlane.xlu1 %161 }
 0x209   :  { %281 = vrsqrt.f32 %v166_v43  ;;  %v165_v45 = vmul.f32 0.0078125, %v162_v44 }
 0x20b   :  { %v167_v46 = vadd.f32 1e-08, %v165_v45 }
 0x20d   :  { %283 = vrsqrt.f32 %v167_v46 }
 0x213   :  { %v282_v47 = vpop.eup %281 }
 0x214   :  { %v171_v49 = vmul.f32 %v282_v47, %v149_v37 }
 0x216   :  { %v179_v50 = vmul.f32 %v205_v48, %v171_v49 }
 0x217   :  { %v284_v51 = vpop.eup %283 }
 0x218   :  { %v172_v52 = vmul.f32 %v284_v51, %v154_v38  ;;  %181 = vst [vmem:[#allocation5] sm:$0xff] %v179_v50 }
 0x21a   :  { %v180_v53 = vmul.f32 %v205_v48, %v172_v52 }
 0x21c   :  { %182 = vst [vmem:[#allocation5 + $0x8] sm:$0xff] %v180_v53 }
 0x21d   :  { %318 = shalt.err (!%p315_p12)
}
 0x21e   :  { %s319_s3 = scalar_lea.hbm %s413_s4, 256 }
 0x21f   :  { %p320_p13 = scmp.ne.s32.totalorder %s413_s4, %s319_s3  ;;  %p323_p0 = scmp.lt.u32.totalorder %s319_s3, %s413_s4 }
 0x221   :  { %p325_p1 = pnand %p323_p0, %p320_p13 }
 0x223   :  { %328 = shalt.err (!%p325_p1)
}
 0x224   :  { %194 = dma.vmem_to_hbm [thread:$0]  %s189_s11, 256, %s413_s4, [#allocation4], %s334_s25, %s334_s25, %s335_s26  }
 0x225   :  { %331 = dma.done.wait [#allocation4], 256  }
 0x226   :  { %332 = vsyncadd [#allocation4], 4294967040 }
 0x227   :  { %198 = vsyncpa [#allocation3], 1 }
 0x228   :  { %199 = vsyncpa [#allocation4], 1 }

// kernel: tpu_custom_call.1
= control target key start
LH: loop header
LB: loop body
LE: loop exit
PB: predicated region body
PF: predicated region fallthrough
CT: control target
= control target key end

     0   :  { %9 = vsyncpa [#allocation3], 0  ;;  %s409_s0 = inlined_call_operand.vmem [shape: s32[16,1], index: 0, kind: input, shape index: {}]   ;;  %s410_s1 = inlined_call_operand.hbm [shape: f32[100,128], index: 1, kind: input, shape index: {}]   ;;  %s411_s2 = inlined_call_operand.vmem [shape: f32[16,128], index: 2, kind: input, shape index: {}]   ;;  %s412_s3 = inlined_call_operand.vmem [shape: f32[1,128], index: 3, kind: input, shape index: {}]   ;;  %s413_s4 = inlined_call_operand.hbm [shape: f32[16,128], index: 4, kind: output, shape index: {}]  }
   0x1   :  { %10 = vsyncpa [#allocation4], 0  ;;  %s333_s15 = smov [#allocation2]   ;;  %s285_s19 = scalar_lea.hbm %s410_s1, 1664 }
   0x2   :  { %s18_s16 = sshll.u32 %s333_s15, 4  ;;  %p286_p0 = scmp.ne.s32.totalorder %s410_s1, %s285_s19  ;;  %s19_s16 = int_to_ptr.vmem [resolvable:$true] %s18_s16 }
   0x3   :  { %p289_p1 = scmp.lt.u32.totalorder %s285_s19, %s410_s1 }
   0x5   :  { %p291_p2 = pnand %p289_p1, %p286_p0 }
   0x7   :  { %294 = shalt.err (!%p291_p2)
}
   0x8   :  { %s295_s24 = scalar_lea.vmem %s19_s16, 1664  ;;  %p300_p4 = scmp.lt.s32.totalorder %s19_s16, %s19_s16 }
   0x9   :  { %p296_p3 = scmp.ne.s32.totalorder %s19_s16, %s295_s24  ;;  %p301_p5 = scmp.lt.s32.totalorder %s295_s24, %s295_s24 }
   0xb   :  { %p302_p6 = por %p301_p5, %p300_p4 }
   0xd   :  { %p303_p7 = pnand %p302_p6, %p296_p3 }
   0xf   :  { %306 = shalt.err (!%p303_p7)
}
  0x10   :  { %s334_s25 = smov 128   ;;  %s335_s26 = smov 8  }
  0x11   :  { %24 = dma.hbm_to_vmem [thread:$0]  %s410_s1, 1664, %s19_s16, [#allocation3], %s334_s25, %s334_s25, %s335_s26  }
  0x12   :  { %329 = dma.done.wait [#allocation3], 1664  }
  0x13   :  { %330 = vsyncadd [#allocation3], 4294965632  ;;  %v336_v0 = vmov 0   ;;  %v32_v1 = vld [vmem:[%s409_s0] sm:$0xff]  ;;  %v33_v2 = vld [vmem:[%s409_s0 + $0x8] sm:$0xff]  ;;  %vm78_vm4 = vcmask 1043456   ;;  %v42_v26 = vlaneseq }
  0x14   :  { %280 = vset.pattern.permute.xlu0 %v336_v0  ;;  %v56_v3 = vld [vmem:[#allocation2] sm:$0xff]  ;;  %vm34_vm0 = vcmp.gt.s32.totalorder %v32_v1, 0  ;;  %vm36_vm1 = vcmp.gt.s32.totalorder %v33_v2, 0  ;;  %v57_v4 = vld [vmem:[#allocation2 + $0x8] sm:$0xff]  ;;  %v58_v5 = vld [vmem:[#allocation2 + $0x10] sm:$0xff]  ;;  %vm71_vm5 = vcmask 818176  }
  0x15   :  { %v59_v6 = vld [vmem:[#allocation2 + $0x18] sm:$0xff]  ;;  %v35_v7 = vsel %vm34_vm0, %v32_v1, 0  ;;  %v37_v8 = vsel %vm36_vm1, %v33_v2, 0  ;;  %v250_v9 = vpack.c.bf16 %v57_v4, %v56_v3  ;;  %v60_v11 = vld [vmem:[#allocation2 + $0x20] sm:$0xff]  ;;  %v61_v12 = vld [vmem:[#allocation2 + $0x28] sm:$0xff]  ;;  %v43_v27 = vand.u32 127, %v42_v26 }
  0x16   :  { %v254_v10 = vpack.c.bf16 %v59_v6, %v58_v5  ;;  %vm38_vm2 = vcmp.lt.s32.totalorder %v35_v7, 99  ;;  %vm40_vm3 = vcmp.lt.s32.totalorder %v37_v8, 99  ;;  %v258_v15 = vpack.c.bf16 %v61_v12, %v60_v11  ;;  %v62_v16 = vld [vmem:[#allocation2 + $0x30] sm:$0xff]  ;;  %v63_v17 = vld [vmem:[#allocation2 + $0x38] sm:$0xff]  ;;  %v64_v19 = vld [vmem:[#allocation2 + $0x40] sm:$0xff] }
  0x17   :  { %v39_v13 = vsel %vm38_vm2, %v35_v7, 99  ;;  %251 = vmatprep.subr.bf16.mxu0 %v250_v9  ;;  %v41_v14 = vsel %vm40_vm3, %v37_v8, 99  ;;  %v262_v18 = vpack.c.bf16 %v63_v17, %v62_v16  ;;  %v65_v20 = vld [vmem:[#allocation2 + $0x48] sm:$0xff]  ;;  %v66_v22 = vld [vmem:[#allocation2 + $0x50] sm:$0xff]  ;;  %v67_v23 = vld [vmem:[#allocation2 + $0x58] sm:$0xff]  ;;  %v337_v29 = vmov 0.0  }
  0x18   :  { %45 = vperm.xlu0 %280, %v39_v13   ;;  %253 = vmatpush3.bf16.msra.mxu0 %v250_v9  ;;  %v266_v21 = vpack.c.bf16 %v65_v20, %v64_v19  ;;  %v270_v24 = vpack.c.bf16 %v67_v23, %v66_v22  ;;  %v68_v25 = vld [vmem:[#allocation2 + $0x60] sm:$0xf]  ;;  %v69_v33 = vld [vmem:[%s411_s2] sm:$0xff] }
  0x19   :  { %255 = vmatprep.subr.bf16.mxu0 %v254_v10  ;;  %v70_v35 = vld [vmem:[%s411_s2 + $0x8] sm:$0xff]  ;;  %v205_v48 = vld [vmem:[%s412_s3] ss:$0 sm:$0xff]  ;;  %s338_s2 = smov [#allocation5]  }
  0x1a   :  { %s188_s11 = sshll.u32 %s338_s2, 4  ;;  %s189_s11 = int_to_ptr.vmem [resolvable:$true] %s188_s11 }
  0x1b   :  { %s307_s12 = scalar_lea.vmem %s189_s11, 256  ;;  %p312_p9 = scmp.lt.s32.totalorder %s189_s11, %s189_s11 }
  0x1c   :  { %48 = vperm.xlu0 %280, %v41_v14   ;;  %257 = vmatpush3.bf16.msra.mxu0 %v254_v10  ;;  %p308_p8 = scmp.ne.s32.totalorder %s189_s11, %s307_s12  ;;  %p313_p10 = scmp.lt.s32.totalorder %s307_s12, %s307_s12 }
  0x1d   :  { %259 = vmatprep.subr.bf16.mxu0 %v258_v15 }
  0x1e   :  { %p314_p11 = por %p313_p10, %p312_p9 }
  0x20   :  { %261 = vmatpush3.bf16.msra.mxu0 %v258_v15  ;;  %p315_p12 = pnand %p314_p11, %p308_p8 }
  0x21   :  { %263 = vmatprep.subr.bf16.mxu0 %v262_v18 }
  0x24   :  { %265 = vmatpush3.bf16.msra.mxu0 %v262_v18 }
  0x25   :  { %267 = vmatprep.subr.bf16.mxu0 %v266_v21 }
  0x28   :  { %269 = vmatpush3.bf16.msra.mxu0 %v266_v21 }
  0x29   :  { %271 = vmatprep.subr.bf16.mxu0 %v270_v24 }
  0x2c   :  { %273 = vmatpush3.bf16.msra.mxu0 %v270_v24 }
  0x2d   :  { %245 = vmatprep.subr.msk.mxu0 %vm78_vm4, %v68_v25 }
  0x30   :  { %246 = vmatpush3.msk.msra.mxu0 %vm78_vm4, %v68_v25 }
  0x97   :  { %v46_v28 = vpop.permute.xlu0 %45 }
  0x98   :  { %vm50_vm6 = vcmp.eq.s32.totalorder %v46_v28, %v43_v27 }
  0x99   :  { %v200_v30 = vsel %vm50_vm6, 1.0, %v337_v29 }
  0x9a   :  { %247 = vmatprep.mubr.msk.f32.mxu0 %vm71_vm5, %v200_v30 }
  0x9b   :  { %v49_v31 = vpop.permute.xlu0 %48 }
  0x9c   :  { %vm51_vm7 = vcmp.eq.s32.totalorder %v49_v31, %v43_v27 }
  0x9d   :  { %v201_v32 = vsel %vm51_vm7, 1.0, %v337_v29 }
  0x9e   :  { %248 = vmatmul.mubr.msk.f32.vlgmr.msra.gmra.mrb[0].mxu0 %vm71_vm5, %v201_v32 }
 0x171   :  { %v249_v34 = vpop.f32.mrb[0].mxu0 }
 0x172   :  { %v148_v36 = vpop.f32.mrb[1].mxu0  ;;  %v154_v38 = vadd.f32 %v249_v34, %v70_v35 }
 0x173   :  { %v149_v37 = vadd.f32 %v148_v36, %v69_v33 }
 0x174   :  { %v158_v40 = vmul.f32 %v154_v38, %v154_v38 }
 0x175   :  { %v157_v39 = vmul.f32 %v149_v37, %v149_v37 }
 0x177   :  { %159 = vadd.xlane.f32.xlu1 %v157_v39 }
 0x17b   :  { %161 = vadd.xlane.f32.xlu1 %v158_v40 }
 0x204   :  { %v160_v41 = vpop.xlane.xlu1 %159 }
 0x205   :  { %v164_v42 = vmul.f32 0.0078125, %v160_v41 }
 0x207   :  { %v166_v43 = vadd.f32 1e-08, %v164_v42 }
 0x208   :  { %v162_v44 = vpop.xlane.xlu1 %161 }
 0x209   :  { %281 = vrsqrt.f32 %v166_v43  ;;  %v165_v45 = vmul.f32 0.0078125, %v162_v44 }
 0x20b   :  { %v167_v46 = vadd.f32 1e-08, %v165_v45 }
 0x20d   :  { %283 = vrsqrt.f32 %v167_v46 }
 0x213   :  { %v282_v47 = vpop.eup %281 }
 0x214   :  { %v171_v49 = vmul.f32 %v282_v47, %v149_v37 }
 0x216   :  { %v179_v50 = vmul.f32 %v205_v48, %v171_v49 }
 0x217   :  { %v284_v51 = vpop.eup %283 }
 0x218   :  { %v172_v52 = vmul.f32 %v284_v51, %v154_v38  ;;  %181 = vst [vmem:[#allocation5] sm:$0xff] %v179_v50 }
 0x21a   :  { %v180_v53 = vmul.f32 %v205_v48, %v172_v52 }
 0x21c   :  { %182 = vst [vmem:[#allocation5 + $0x8] sm:$0xff] %v180_v53 }
 0x21d   :  { %318 = shalt.err (!%p315_p12)
}
 0x21e   :  { %s319_s3 = scalar_lea.hbm %s413_s4, 256 }
 0x21f   :  { %p320_p13 = scmp.ne.s32.totalorder %s413_s4, %s319_s3  ;;  %p323_p0 = scmp.lt.u32.totalorder %s319_s3, %s413_s4 }
 0x221   :  { %p325_p1 = pnand %p323_p0, %p320_p13 }
 0x223   :  { %328 = shalt.err (!%p325_p1)
}
 0x224   :  { %194 = dma.vmem_to_hbm [thread:$0]  %s189_s11, 256, %s413_s4, [#allocation4], %s334_s25, %s334_s25, %s335_s26  }
 0x225   :  { %331 = dma.done.wait [#allocation4], 256  }
 0x226   :  { %332 = vsyncadd [#allocation4], 4294967040 }
 0x227   :  { %198 = vsyncpa [#allocation3], 1 }
 0x228   :  { %199 = vsyncpa [#allocation4], 1 }

</bundles_post_ra>
